<compile_context>
chip_gen: v6e
topology: v6e:2x2x1
jax: 0.10.0
libtpu: 0.0.40
codegen_flags: <defaults>
</compile_context>

<pallas_src>
import jax
import jax.numpy as jnp
from jax.experimental import pallas as pl
from jax.experimental.pallas import tpu as pltpu

_LANES = 128      # vreg lane width
_SUBLANES = 8     # vreg sublane height (min row tile)


def _qnet_kernel(x_ref, s_ref, w_ref, o_ref):
    """One row-tile of the QNetShared forward.

    x_ref : (tb, 128) f32  -- [output | prev_trv | 1.0 | zeros...] per row
    s_ref : (tb, 128) f32  -- [sample | zeros...] per row
    w_ref : (3, 128, 128) f32 -- [W1a | W2_mean | W2_logcov] (biases folded)
    o_ref : (tb, 128) f32  -- [ret | zeros...] per row
    """
    # Layer 1: single dot; b1 arrives via the ones-lane of x.  The folded
    # "1" survives ReLU (relu(1) = 1) and carries b2 into layer 2.
    h = jnp.maximum(
        jnp.dot(x_ref[...], w_ref[0], preferred_element_type=jnp.float32), 0.0)

    # Layer 2: mean and logcov column groups, both landing on lanes
    # [0, outsize) so the epilogue is elementwise-aligned with the sample.
    mean = jnp.dot(h, w_ref[1], preferred_element_type=jnp.float32)
    logcov = jnp.dot(h, w_ref[2], preferred_element_type=jnp.float32)

    # diag(sqrt(exp(logcov)+1e-3)) @ sample == elementwise scale * sample.
    # Padded lanes: logcov==0, sample==0, mean==0 -> output lane is exactly 0.
    o_ref[...] = mean + jnp.sqrt(jnp.exp(logcov) + 0.001) * s_ref[...]


def prepare_params(params):
    """One-time parameter packing (hoisted off the per-call hot path).

    Builds a single (3, 128, 128) f32 slab:
      slab[0] = W1 with b1 folded (plus the ones-lane carry column),
      slab[1] = W2 mean columns  (+ b2[:outsize])  at lanes [0, outsize),
      slab[2] = W2 logcov columns(+ b2[outsize:])  at lanes [0, outsize).
    Returns (slab, in_dim, outsize).
    """
    w1, b1, w2, b2 = (jnp.asarray(p, jnp.float32) for p in params)
    in_dim, hidden = w1.shape
    two_out = w2.shape[1]
    outsize = two_out // 2
    assert in_dim + 1 <= _LANES and hidden + 1 <= _LANES and two_out <= _LANES

    slab = jnp.zeros((3, _LANES, _LANES), jnp.float32)
    # Layer 1 (bias folded; carry column keeps a 1.0 alive in h).
    slab = slab.at[0, :in_dim, :hidden].set(w1)
    slab = slab.at[0, in_dim, :hidden].set(b1)
    slab = slab.at[0, in_dim, hidden].set(1.0)
    # Layer 2, mean columns.
    slab = slab.at[1, :hidden, :outsize].set(w2[:, :outsize])
    slab = slab.at[1, hidden, :outsize].set(b2[:outsize])
    # Layer 2, logcov columns (lane-aligned with mean & sample).
    slab = slab.at[2, :hidden, :outsize].set(w2[:, outsize:])
    slab = slab.at[2, hidden, :outsize].set(b2[outsize:])
    return slab, in_dim, outsize


def _pack_rows(x, rows):
    """Place x into the top-left of a zero-initialized (rows, 128) f32 slab."""
    b, d = x.shape
    buf = jnp.zeros((rows, _LANES), jnp.float32)
    return buf.at[:b, :d].set(x.astype(jnp.float32))


def qnet_shared_forward_batched(outputs, prev_trvs, prepared, samples):
    """Batched forward: one kernel launch for B independent rows.

    The batch/step loop is the pallas grid; weights stay resident in VMEM
    across all grid iterations (constant index_map).
    """
    slab, in_dim, outsize = prepared
    batch = outputs.shape[0]

    tb = _LANES if batch >= _LANES else _SUBLANES
    bp = pl.cdiv(batch, tb) * tb

    # concat([output, prev_trv, 1.0]) once, in the wrapper; the ones-lane
    # folds both biases into the matmuls.
    x = jnp.concatenate(
        [outputs.astype(jnp.float32), prev_trvs.astype(jnp.float32),
         jnp.ones((batch, 1), jnp.float32)], axis=-1)
    xp = _pack_rows(x, bp)
    sp = _pack_rows(samples, bp)

    out = pl.pallas_call(
        _qnet_kernel,
        out_shape=jax.ShapeDtypeStruct((bp, _LANES), jnp.float32),
        grid=(bp // tb,),
        in_specs=[
            pl.BlockSpec((tb, _LANES), lambda i: (i, 0)),            # x rows
            pl.BlockSpec((tb, _LANES), lambda i: (i, 0)),            # samples
            pl.BlockSpec((3, _LANES, _LANES), lambda i: (0, 0, 0)),  # weights (resident)
        ],
        out_specs=pl.BlockSpec((tb, _LANES), lambda i: (i, 0)),
        compiler_params=pltpu.CompilerParams(
            dimension_semantics=("parallel",)),
    )(xp, sp, slab)

    return out[:batch, :outsize], samples


def qnet_shared_forward(output, prev_trv, prepared, sample):
    """Single-call forward mirroring QNetShared.forward(output, prev_trv, t, sample)."""
    ret, _ = qnet_shared_forward_batched(
        output[None, :], prev_trv[None, :], prepared, sample[None, :])
    return ret[0], sample


def init_params(key, in_dim, hidden, outsize):
    """Deterministic synthetic params for make_sequence(0):
       Linear(in_dim, hidden) -> ReLU -> Linear(hidden, 2*outsize)."""
    k1, k2, k3, k4 = jax.random.split(key, 4)
    w1 = jax.random.normal(k1, (in_dim, hidden), jnp.float32) * 0.1
    b1 = jax.random.normal(k2, (hidden,), jnp.float32) * 0.1
    w2 = jax.random.normal(k3, (hidden, 2 * outsize), jnp.float32) * 0.1
    b2 = jax.random.normal(k4, (2 * outsize,), jnp.float32) * 0.1
    return (w1, b1, w2, b2)


def _reference(output, prev_trv, params, sample):
    w1, b1, w2, b2 = params
    outsize = sample.shape[-1]
    x = jnp.concatenate([output, prev_trv], axis=-1)
    h = jnp.maximum(x @ w1 + b1, 0.0)
    o = h @ w2 + b2
    mean, logcov = o[..., :outsize], o[..., outsize:]
    return mean + jnp.sqrt(jnp.exp(logcov) + 0.001) * sample


if __name__ == "__main__":
    key = jax.random.PRNGKey(0)
    k_par, k_out, k_trv, k_smp, k_bout, k_btrv, k_bsmp = jax.random.split(key, 7)

    out_dim, trv_dim, hidden, outsize = 24, 8, 32, 8
    in_dim = out_dim + trv_dim
    batch = 16

    params = init_params(k_par, in_dim, hidden, outsize)
    prepared = prepare_params(params)     # one-time packing, off the hot path

    # --- single-call forward (semantics of the PyTorch module) ---
    output = jax.random.normal(k_out, (out_dim,), jnp.float32)
    prev_trv = jax.random.normal(k_trv, (trv_dim,), jnp.float32)
    # equivalent of MultivariateNormal(zeros, eye).sample(), drawn host-side
    sample = jax.random.normal(k_smp, (outsize,), jnp.float32)

    ret, smp = qnet_shared_forward(output, prev_trv, prepared, sample)
    jax.block_until_ready(ret)
    ref = _reference(output, prev_trv, params, sample)
    assert ret.shape == (outsize,)
    assert jnp.allclose(ret, ref, atol=1e-5, rtol=1e-5)

    # --- batched forward: one launch, weights resident, grid over row tiles ---
    outputs = jax.random.normal(k_bout, (batch, out_dim), jnp.float32)
    prev_trvs = jax.random.normal(k_btrv, (batch, trv_dim), jnp.float32)
    samples = jax.random.normal(k_bsmp, (batch, outsize), jnp.float32)

    rets, _ = qnet_shared_forward_batched(outputs, prev_trvs, prepared, samples)
    jax.block_until_ready(rets)
    refs = _reference(outputs, prev_trvs, params, samples)
    assert rets.shape == (batch, outsize)
    assert jnp.allclose(rets, refs, atol=1e-5, rtol=1e-5)

    print("KERNEL_OK")
</pallas_src>

<mosaic_0001>
module attributes {stable_mosaic.version = 11 : i64} {
  func.func @_qnet_kernel(%arg0: i32, %arg1: memref<8x128xf32, #tpu.memory_space<vmem>>, %arg2: memref<8x128xf32, #tpu.memory_space<vmem>>, %arg3: memref<3x128x128xf32, #tpu.memory_space<vmem>>, %arg4: memref<8x128xf32, #tpu.memory_space<vmem>>) attributes {dimension_semantics = [#tpu.dimension_semantics<parallel>], iteration_bounds = array<i64: 1>, scalar_prefetch = 0 : i64, scratch_operands = 0 : i64, tpu.core_type = #tpu.core_type<tc>, window_params = [{transform_indices = @transform_0, window_bounds = array<i64: 8, 128>}, {transform_indices = @transform_1, window_bounds = array<i64: 8, 128>}, {pipeline_mode = #tpu.pipeline_mode<synchronous>, transform_indices = @transform_2, window_bounds = array<i64: 3, 128, 128>}, {transform_indices = @transform_3, window_bounds = array<i64: 8, 128>}]} {
    %c0 = arith.constant 0 : index
    %c0_0 = arith.constant 0 : index
    %0 = vector.load %arg1[%c0, %c0_0] : memref<8x128xf32, #tpu.memory_space<vmem>>, vector<8x128xf32>
    %c0_1 = arith.constant 0 : index
    %c0_2 = arith.constant 0 : index
    %c0_3 = arith.constant 0 : index
    %1 = vector.load %arg3[%c0_1, %c0_2, %c0_3] : memref<3x128x128xf32, #tpu.memory_space<vmem>>, vector<1x128x128xf32>
    %2 = vector.shape_cast %1 : vector<1x128x128xf32> to vector<128x128xf32>
    %cst = arith.constant dense<0.000000e+00> : vector<8x128xf32>
    %3 = tpu.matmul %0, %2, %cst {dimension_numbers = #tpu.dot_dimension_numbers<[1], [0], [0], [1], [0, 0, 1, 1], [], []>} : vector<8x128xf32>, vector<128x128xf32>, vector<8x128xf32> -> vector<8x128xf32>
    %cst_4 = arith.constant 0.000000e+00 : f32
    %4 = vector.broadcast %cst_4 : f32 to vector<8x128xf32>
    %5 = arith.maximumf %3, %4 : vector<8x128xf32>
    %c1 = arith.constant 1 : index
    %c0_5 = arith.constant 0 : index
    %c0_6 = arith.constant 0 : index
    %6 = vector.load %arg3[%c1, %c0_5, %c0_6] : memref<3x128x128xf32, #tpu.memory_space<vmem>>, vector<1x128x128xf32>
    %7 = vector.shape_cast %6 : vector<1x128x128xf32> to vector<128x128xf32>
    %cst_7 = arith.constant dense<0.000000e+00> : vector<8x128xf32>
    %8 = tpu.matmul %5, %7, %cst_7 {dimension_numbers = #tpu.dot_dimension_numbers<[1], [0], [0], [1], [0, 0, 1, 1], [], []>} : vector<8x128xf32>, vector<128x128xf32>, vector<8x128xf32> -> vector<8x128xf32>
    %c2 = arith.constant 2 : index
    %c0_8 = arith.constant 0 : index
    %c0_9 = arith.constant 0 : index
    %9 = vector.load %arg3[%c2, %c0_8, %c0_9] : memref<3x128x128xf32, #tpu.memory_space<vmem>>, vector<1x128x128xf32>
    %10 = vector.shape_cast %9 : vector<1x128x128xf32> to vector<128x128xf32>
    %cst_10 = arith.constant dense<0.000000e+00> : vector<8x128xf32>
    %11 = tpu.matmul %5, %10, %cst_10 {dimension_numbers = #tpu.dot_dimension_numbers<[1], [0], [0], [1], [0, 0, 1, 1], [], []>} : vector<8x128xf32>, vector<128x128xf32>, vector<8x128xf32> -> vector<8x128xf32>
    %12 = math.exp %11 : vector<8x128xf32>
    %cst_11 = arith.constant 1.000000e-03 : f32
    %13 = vector.broadcast %cst_11 : f32 to vector<8x128xf32>
    %14 = arith.addf %12, %13 : vector<8x128xf32>
    %15 = math.sqrt %14 : vector<8x128xf32>
    %c0_12 = arith.constant 0 : index
    %c0_13 = arith.constant 0 : index
    %16 = vector.load %arg2[%c0_12, %c0_13] : memref<8x128xf32, #tpu.memory_space<vmem>>, vector<8x128xf32>
    %17 = arith.mulf %15, %16 : vector<8x128xf32>
    %18 = arith.addf %8, %17 : vector<8x128xf32>
    %c0_14 = arith.constant 0 : index
    %c0_15 = arith.constant 0 : index
    %19 = vector.load %arg4[%c0_14, %c0_15] : memref<8x128xf32, #tpu.memory_space<vmem>>, vector<8x128xf32>
    tpu.vector_store %arg4[%c0_14, %c0_15], %18 {strides = array<i32>} : memref<8x128xf32, #tpu.memory_space<vmem>>, vector<8x128xf32>,
    return
  }
  func.func @transform_0(%arg0: i32) -> (i32, i32) {
    %c0_i32 = arith.constant 0 : i32
    %c0_i32_0 = arith.constant 0 : i32
    return %arg0, %c0_i32 : i32, i32
  }
  func.func @transform_1(%arg0: i32) -> (i32, i32) {
    %c0_i32 = arith.constant 0 : i32
    %c0_i32_0 = arith.constant 0 : i32
    return %arg0, %c0_i32 : i32, i32
  }
  func.func @transform_2(%arg0: i32) -> (i32, i32, i32) {
    %c0_i32 = arith.constant 0 : i32
    %c0_i32_0 = arith.constant 0 : i32
    %c0_i32_1 = arith.constant 0 : i32
    %c0_i32_2 = arith.constant 0 : i32
    return %c0_i32, %c0_i32_0, %c0_i32_1 : i32, i32, i32
  }
  func.func @transform_3(%arg0: i32) -> (i32, i32) {
    %c0_i32 = arith.constant 0 : i32
    %c0_i32_0 = arith.constant 0 : i32
    return %arg0, %c0_i32 : i32, i32
  }
}

</mosaic_0001>

<bundles_post_ra>
// kernel: tpu_custom_call.1
= control target key start
LH: loop header
LB: loop body
LE: loop exit
PB: predicated region body
PF: predicated region fallthrough
CT: control target
= control target key end

     0   :  { %8 = vsyncpa [#allocation3], 0  ;;  %s691_s0 = inlined_call_operand.hbm [shape: f32[8,128], index: 0, kind: input, shape index: {}]   ;;  %s692_s1 = inlined_call_operand.hbm [shape: f32[8,128], index: 1, kind: input, shape index: {}]   ;;  %s693_s2 = inlined_call_operand.hbm [shape: f32[3,128,128], index: 2, kind: input, shape index: {}]   ;;  %s694_s3 = inlined_call_operand.hbm [shape: f32[8,128], index: 3, kind: output, shape index: {}]  }
   0x1   :  { %9 = vsyncpa [#allocation6], 0 }
   0x2   :  { %10 = vsyncpa [#allocation4], 0  ;;  %s597_s12 = smov [#allocation5]   ;;  %s598_s14 = smov [#allocation2]  }
   0x3   :  { %s27_s13 = sshll.u32 %s597_s12, 4  ;;  %s17_s15 = sshll.u32 %s598_s14, 4  ;;  %s28_s13 = int_to_ptr.vmem [resolvable:$true] %s27_s13  ;;  %s18_s15 = int_to_ptr.vmem [resolvable:$true] %s17_s15 }
   0x4   :  { %s519_s16 = scalar_lea.vmem %s28_s13, 128  ;;  %p524_p1 = scmp.lt.s32.totalorder %s28_s13, %s28_s13 }
   0x5   :  { %p520_p0 = scmp.ne.s32.totalorder %s28_s13, %s519_s16  ;;  %p525_p2 = scmp.lt.s32.totalorder %s519_s16, %s519_s16 }
   0x7   :  { %p526_p3 = por %p525_p2, %p524_p1 }
   0x9   :  { %p527_p4 = pnand %p526_p3, %p520_p0 }
   0xb   :  { %530 = shalt.err (!%p527_p4)
}
   0xc   :  { %30 = dma.hbm_to_vmem [thread:$0]  %s692_s1, 128, %s28_s13, [#allocation6]  }
   0xd   :  { %s539_s19 = scalar_lea.vmem %s18_s15, 128  ;;  %p544_p6 = scmp.lt.s32.totalorder %s18_s15, %s18_s15 }
   0xe   :  { %p540_p5 = scmp.ne.s32.totalorder %s18_s15, %s539_s19  ;;  %p545_p7 = scmp.lt.s32.totalorder %s539_s19, %s539_s19 }
  0x10   :  { %p546_p8 = por %p545_p7, %p544_p6 }
  0x12   :  { %p547_p9 = pnand %p546_p8, %p540_p5 }
  0x14   :  { %550 = shalt.err (!%p547_p9)
}
  0x15   :  { %20 = dma.hbm_to_vmem [thread:$0]  %s691_s0, 128, %s18_s15, [#allocation3]  }
  0x16   :  { %s599_s22 = smov [#allocation7]  }
  0x17   :  { %s36_s23 = sshll.u32 %s599_s22, 4  ;;  %s37_s23 = int_to_ptr.vmem [resolvable:$true] %s36_s23 }
  0x18   :  { %s559_s24 = scalar_lea.vmem %s37_s23, 6144  ;;  %p564_p11 = scmp.lt.s32.totalorder %s37_s23, %s37_s23 }
  0x19   :  { %p560_p10 = scmp.ne.s32.totalorder %s37_s23, %s559_s24  ;;  %p565_p12 = scmp.lt.s32.totalorder %s559_s24, %s559_s24 }
  0x1b   :  { %p566_p13 = por %p565_p12, %p564_p11 }
  0x1d   :  { %p567_p0 = pnand %p566_p13, %p560_p10 }
  0x1f   :  { %570 = shalt.err (!%p567_p0)
}
  0x20   :  { %s600_s1 = smov 128   ;;  %s601_s25 = smov 8  }
  0x21   :  { %42 = dma.hbm_to_vmem [thread:$0]  %s693_s2, 6144, %s37_s23, [#allocation6], %s600_s1, %s600_s1, %s601_s25  }
  0x22   :  { %591 = dma.done.wait [#allocation3], 128  }
  0x23   :  { %592 = vsyncadd [#allocation3], 4294967168 }
  0x24   :  { %593 = dma.done.wait [#allocation6], 6272  }
  0x25   :  { %594 = vsyncadd [#allocation6], 4294961024  ;;  %v602_v0 = vmov 0.0   ;;  %vm603_vm0 = vmmov 0   ;;  %v68_v1 = vld [vmem:[#allocation7 + $0x78] sm:$0xff]  ;;  %v67_v2 = vld [vmem:[#allocation7 + $0x70] sm:$0xff] }
  0x26   :  { %394 = vmatprep.subr.mxu0 %v602_v0  ;;  %426 = vmatprep.mubr.msk.f32.mxu0 %vm603_vm0, %v602_v0  ;;  %v66_v3 = vld [vmem:[#allocation7 + $0x68] sm:$0xff]  ;;  %v65_v4 = vld [vmem:[#allocation7 + $0x60] sm:$0xff]  ;;  %v173_v5 = vld [vmem:[#allocation7 + $0x178] sm:$0xff]  ;;  %s604_s0 = smov [#allocation8]  }
  0x27   :  { %429 = vmatprep.subr.mxu1 %v602_v0  ;;  %461 = vmatprep.mubr.msk.f32.mxu1 %vm603_vm0, %v602_v0  ;;  %v64_v6 = vld [vmem:[#allocation7 + $0x58] sm:$0xff]  ;;  %v172_v7 = vld [vmem:[#allocation7 + $0x170] sm:$0xff]  ;;  %v171_v8 = vld [vmem:[#allocation7 + $0x168] sm:$0xff]  ;;  %s333_s2 = sshll.u32 %s604_s0, 4  ;;  %s334_s2 = int_to_ptr.vmem [resolvable:$true] %s333_s2 }
  0x28   :  { %395 = vmatpush3.msra.mxu0 %v68_v1  ;;  %430 = vmatpush3.msra.mxu1 %v173_v5  ;;  %v63_v9 = vld [vmem:[#allocation7 + $0x50] sm:$0xff]  ;;  %v170_v10 = vld [vmem:[#allocation7 + $0x160] sm:$0xff]  ;;  %v62_v11 = vld [vmem:[#allocation7 + $0x48] sm:$0xff]  ;;  %s571_s28 = scalar_lea.vmem %s334_s2, 128  ;;  %p576_p2 = scmp.lt.s32.totalorder %s334_s2, %s334_s2 }
  0x29   :  { %396 = vmatprep.subr.mxu0 %v602_v0  ;;  %431 = vmatprep.subr.mxu1 %v602_v0  ;;  %v169_v12 = vld [vmem:[#allocation7 + $0x158] sm:$0xff]  ;;  %v61_v13 = vld [vmem:[#allocation7 + $0x40] sm:$0xff]  ;;  %v168_v14 = vld [vmem:[#allocation7 + $0x150] sm:$0xff]  ;;  %p572_p1 = scmp.ne.s32.totalorder %s334_s2, %s571_s28  ;;  %p577_p3 = scmp.lt.s32.totalorder %s571_s28, %s571_s28 }
  0x2a   :  { %397 = vmatpush3.msra.mxu0 %v67_v2  ;;  %432 = vmatpush3.msra.mxu1 %v172_v7  ;;  %v60_v15 = vld [vmem:[#allocation7 + $0x38] sm:$0xff]  ;;  %v167_v16 = vld [vmem:[#allocation7 + $0x148] sm:$0xff]  ;;  %v59_v17 = vld [vmem:[#allocation7 + $0x30] sm:$0xff] }
  0x2b   :  { %398 = vmatprep.subr.mxu0 %v602_v0  ;;  %433 = vmatprep.subr.mxu1 %v602_v0  ;;  %v166_v18 = vld [vmem:[#allocation7 + $0x140] sm:$0xff]  ;;  %v58_v19 = vld [vmem:[#allocation7 + $0x28] sm:$0xff]  ;;  %v165_v20 = vld [vmem:[#allocation7 + $0x138] sm:$0xff]  ;;  %p578_p4 = por %p577_p3, %p576_p2 }
  0x2c   :  { %399 = vmatpush3.msra.mxu0 %v66_v3  ;;  %434 = vmatpush3.msra.mxu1 %v171_v8  ;;  %v57_v21 = vld [vmem:[#allocation7 + $0x20] sm:$0xff]  ;;  %v164_v22 = vld [vmem:[#allocation7 + $0x130] sm:$0xff]  ;;  %v56_v23 = vld [vmem:[#allocation7 + $0x18] sm:$0xff] }
  0x2d   :  { %400 = vmatprep.subr.mxu0 %v602_v0  ;;  %435 = vmatprep.subr.mxu1 %v602_v0  ;;  %v163_v24 = vld [vmem:[#allocation7 + $0x128] sm:$0xff]  ;;  %v55_v25 = vld [vmem:[#allocation7 + $0x10] sm:$0xff]  ;;  %v162_v26 = vld [vmem:[#allocation7 + $0x120] sm:$0xff]  ;;  %p579_p5 = pnand %p578_p4, %p572_p1 }
  0x2e   :  { %401 = vmatpush3.msra.mxu0 %v65_v4  ;;  %436 = vmatpush3.msra.mxu1 %v170_v10  ;;  %v54_v27 = vld [vmem:[#allocation7 + $0x8] sm:$0xff]  ;;  %v161_v28 = vld [vmem:[#allocation7 + $0x118] sm:$0xff]  ;;  %v53_v29 = vld [vmem:[#allocation7] sm:$0xff] }
  0x2f   :  { %402 = vmatprep.subr.mxu0 %v602_v0  ;;  %437 = vmatprep.subr.mxu1 %v602_v0  ;;  %v52_v30 = vld [vmem:[#allocation2] sm:$0xff]  ;;  %v156_v31 = vld [vmem:[#allocation7 + $0xf8] sm:$0xff]  ;;  %v154_v34 = vld [vmem:[#allocation7 + $0xe8] sm:$0xff] }
  0x30   :  { %403 = vmatpush3.msra.mxu0 %v64_v6  ;;  %438 = vmatpush3.msra.mxu1 %v169_v12  ;;  %v160_v32 = vld [vmem:[#allocation7 + $0x110] sm:$0xff]  ;;  %v153_v35 = vld [vmem:[#allocation7 + $0xe0] sm:$0xff]  ;;  %v152_v36 = vld [vmem:[#allocation7 + $0xd8] sm:$0xff] }
  0x31   :  { %404 = vmatprep.subr.mxu0 %v602_v0  ;;  %439 = vmatprep.subr.mxu1 %v602_v0  ;;  %v155_v33 = vld [vmem:[#allocation7 + $0xf0] sm:$0xff]  ;;  %v150_v38 = vld [vmem:[#allocation7 + $0xc8] sm:$0xff]  ;;  %v149_v39 = vld [vmem:[#allocation7 + $0xc0] sm:$0xff] }
  0x32   :  { %405 = vmatpush3.msra.mxu0 %v63_v9  ;;  %440 = vmatpush3.msra.mxu1 %v168_v14  ;;  %v151_v37 = vld [vmem:[#allocation7 + $0xd0] sm:$0xff]  ;;  %v148_v40 = vld [vmem:[#allocation7 + $0xb8] sm:$0xff]  ;;  %v146_v42 = vld [vmem:[#allocation7 + $0xa8] sm:$0xff] }
  0x33   :  { %406 = vmatprep.subr.mxu0 %v602_v0  ;;  %441 = vmatprep.subr.mxu1 %v602_v0  ;;  %v147_v41 = vld [vmem:[#allocation7 + $0xb0] sm:$0xff]  ;;  %v145_v43 = vld [vmem:[#allocation7 + $0xa0] sm:$0xff]  ;;  %v144_v44 = vld [vmem:[#allocation7 + $0x98] sm:$0xff] }
  0x34   :  { %407 = vmatpush3.msra.mxu0 %v62_v11  ;;  %442 = vmatpush3.msra.mxu1 %v167_v16  ;;  %v143_v45 = vld [vmem:[#allocation7 + $0x90] sm:$0xff]  ;;  %v159_v46 = vld [vmem:[#allocation7 + $0x108] sm:$0xff]  ;;  %v158_v48 = vld [vmem:[#allocation7 + $0x100] sm:$0xff] }
  0x35   :  { %408 = vmatprep.subr.mxu0 %v602_v0  ;;  %443 = vmatprep.subr.mxu1 %v602_v0  ;;  %v142_v47 = vld [vmem:[#allocation7 + $0x88] sm:$0xff]  ;;  %v141_v49 = vld [vmem:[#allocation7 + $0x80] sm:$0xff]  ;;  %v254_v63 = vld [vmem:[#allocation5] sm:$0xff] }
  0x36   :  { %409 = vmatpush3.msra.mxu0 %v61_v13  ;;  %444 = vmatpush3.msra.mxu1 %v166_v18 }
  0x37   :  { %410 = vmatprep.subr.mxu0 %v602_v0  ;;  %445 = vmatprep.subr.mxu1 %v602_v0 }
  0x38   :  { %411 = vmatpush3.msra.mxu0 %v60_v15  ;;  %446 = vmatpush3.msra.mxu1 %v165_v20 }
  0x39   :  { %412 = vmatprep.subr.mxu0 %v602_v0  ;;  %447 = vmatprep.subr.mxu1 %v602_v0 }
  0x3a   :  { %413 = vmatpush3.msra.mxu0 %v59_v17  ;;  %448 = vmatpush3.msra.mxu1 %v164_v22 }
  0x3b   :  { %414 = vmatprep.subr.mxu0 %v602_v0  ;;  %449 = vmatprep.subr.mxu1 %v602_v0 }
  0x3c   :  { %415 = vmatpush3.msra.mxu0 %v58_v19  ;;  %450 = vmatpush3.msra.mxu1 %v163_v24 }
  0x3d   :  { %416 = vmatprep.subr.mxu0 %v602_v0  ;;  %451 = vmatprep.subr.mxu1 %v602_v0 }
  0x3e   :  { %417 = vmatpush3.msra.mxu0 %v57_v21  ;;  %452 = vmatpush3.msra.mxu1 %v162_v26 }
  0x3f   :  { %418 = vmatprep.subr.mxu0 %v602_v0  ;;  %453 = vmatprep.subr.mxu1 %v602_v0 }
  0x40   :  { %419 = vmatpush3.msra.mxu0 %v56_v23  ;;  %454 = vmatpush3.msra.mxu1 %v161_v28 }
  0x41   :  { %420 = vmatprep.subr.mxu0 %v602_v0  ;;  %455 = vmatprep.subr.mxu1 %v602_v0 }
  0x42   :  { %421 = vmatpush3.msra.mxu0 %v55_v25  ;;  %456 = vmatpush3.msra.mxu1 %v160_v32 }
  0x43   :  { %422 = vmatprep.subr.mxu0 %v602_v0  ;;  %457 = vmatprep.subr.mxu1 %v602_v0 }
  0x44   :  { %423 = vmatpush3.msra.mxu0 %v54_v27  ;;  %458 = vmatpush3.msra.mxu1 %v159_v46 }
  0x45   :  { %424 = vmatprep.subr.mxu0 %v602_v0  ;;  %459 = vmatprep.subr.mxu1 %v602_v0 }
  0x46   :  { %425 = vmatpush3.msra.mxu0 %v53_v29  ;;  %460 = vmatpush3.msra.mxu1 %v158_v48 }
  0x47   :  { %427 = vmatmul.mubr.f32.vlgmr.msra.gmra.mxu0 %v52_v30  ;;  %464 = vmatprep.subr.mxu0 %v602_v0 }
  0x48   :  { %465 = vmatpush3.msra.mxu0 %v156_v31  ;;  %496 = vmatprep.mubr.msk.f32.mxu0 %vm603_vm0, %v602_v0 }
  0x49   :  { %466 = vmatprep.subr.mxu0 %v602_v0 }
  0x4a   :  { %467 = vmatpush3.msra.mxu0 %v155_v33 }
  0x4b   :  { %468 = vmatprep.subr.mxu0 %v602_v0 }
  0x4c   :  { %469 = vmatpush3.msra.mxu0 %v154_v34 }
  0x4d   :  { %470 = vmatprep.subr.mxu0 %v602_v0 }
  0x4e   :  { %471 = vmatpush3.msra.mxu0 %v153_v35 }
  0x4f   :  { %472 = vmatprep.subr.mxu0 %v602_v0 }
  0x50   :  { %473 = vmatpush3.msra.mxu0 %v152_v36 }
  0x51   :  { %474 = vmatprep.subr.mxu0 %v602_v0 }
  0x52   :  { %475 = vmatpush3.msra.mxu0 %v151_v37 }
  0x53   :  { %476 = vmatprep.subr.mxu0 %v602_v0 }
  0x54   :  { %477 = vmatpush3.msra.mxu0 %v150_v38 }
  0x55   :  { %478 = vmatprep.subr.mxu0 %v602_v0 }
  0x56   :  { %479 = vmatpush3.msra.mxu0 %v149_v39 }
  0x57   :  { %480 = vmatprep.subr.mxu0 %v602_v0 }
  0x58   :  { %481 = vmatpush3.msra.mxu0 %v148_v40 }
  0x59   :  { %482 = vmatprep.subr.mxu0 %v602_v0 }
  0x5a   :  { %483 = vmatpush3.msra.mxu0 %v147_v41 }
  0x5b   :  { %484 = vmatprep.subr.mxu0 %v602_v0 }
  0x5c   :  { %485 = vmatpush3.msra.mxu0 %v146_v42 }
  0x5d   :  { %486 = vmatprep.subr.mxu0 %v602_v0 }
  0x5e   :  { %487 = vmatpush3.msra.mxu0 %v145_v43 }
  0x5f   :  { %488 = vmatprep.subr.mxu0 %v602_v0 }
  0x60   :  { %489 = vmatpush3.msra.mxu0 %v144_v44 }
  0x61   :  { %490 = vmatprep.subr.mxu0 %v602_v0 }
  0x62   :  { %491 = vmatpush3.msra.mxu0 %v143_v45 }
  0x63   :  { %492 = vmatprep.subr.mxu0 %v602_v0 }
  0x64   :  { %493 = vmatpush3.msra.mxu0 %v142_v47 }
  0x65   :  { %494 = vmatprep.subr.mxu0 %v602_v0 }
  0x66   :  { %495 = vmatpush3.msra.mxu0 %v141_v49 }
 0x107   :  { %v135_v50 = vpop.f32.mrf.mxu0 }
 0x108   :  { %v139_v51 = vmax.f32 %v135_v50, 0.0 }
 0x109   :  { %v428_v52 = vpop.f32.mrf.mxu0 }
 0x10a   :  { %462 = vmatmul.mubr.f32.vlgmr.msra.gmra.mxu1 %v139_v51  ;;  %497 = vmatmul.mubr.f32.vlgmr.msra.gmra.mxu0 %v139_v51 }
 0x1ca   :  { %v240_v53 = vpop.f32.mrf.mxu1  ;;  %v322_v54 = vpop.f32.mrf.mxu0 }
 0x1cb   :  { %v244_v55 = vmul.f32 1.442695, %v240_v53 }
 0x1cc   :  { %v463_v56 = vpop.f32.mrf.mxu1  ;;  %v498_v57 = vpop.f32.mrf.mxu0 }
 0x1cd   :  { %507 = vpow2.f32 %v244_v55 }
 0x1da   :  { %v508_v58 = vpop.eup %507 }
 0x1db   :  { %v246_v59 = vadd.f32 0.001, %v508_v58 }
 0x1dd   :  { %509 = vrsqrt.f32 %v246_v59  ;;  %vm249_vm1 = vcmp.eq.f32.partialorder %v246_v59, inf  ;;  %v252_v62 = vand.u32 2147483648, %v246_v59  ;;  %vm251_vm2 = vcmp.eq.f32.partialorder %v246_v59, 0.0 }
 0x1ea   :  { %v510_v60 = vpop.eup %509 }
 0x1eb   :  { %v248_v61 = vmul.f32 %v510_v60, %v246_v59 }
 0x1ed   :  { %v250_v0 = vsel %vm249_vm1, %v246_v59, %v248_v61 }
 0x1ee   :  { %v253_v1 = vsel %vm251_vm2, %v252_v62, %v250_v0 }
 0x1ef   :  { %v255_v2 = vmul.f32 %v254_v63, %v253_v1 }
 0x1f1   :  { %v323_v3 = vadd.f32 %v322_v54, %v255_v2 }
 0x1f3   :  { %326 = vst [vmem:[#allocation8] sm:$0xff] %v323_v3 }
 0x1f4   :  { %582 = shalt.err (!%p579_p5)
}
 0x1f5   :  { %336 = dma.vmem_to_hbm [thread:$0]  %s334_s2, 128, %s694_s3, [#allocation4]  }
 0x1f6   :  { %595 = dma.done.wait [#allocation4], 128  }
 0x1f7   :  { %596 = vsyncadd [#allocation4], 4294967168 }
 0x1f8   :  { %340 = vsyncpa [#allocation3], 1 }
 0x1f9   :  { %341 = vsyncpa [#allocation6], 1 }
 0x1fa   :  { %342 = vsyncpa [#allocation4], 1 }

</bundles_post_ra>
